<compile_context>
chip_gen: v5e
topology: v5e:2x2
jax: 0.10.0
libtpu: 0.0.40
codegen_flags: <defaults>
</compile_context>

<pallas_src>
import math

import jax
import jax.numpy as jnp
from jax.experimental import pallas as pl
from jax.experimental.pallas import tpu as pltpu


_LANE = 128
_EXPAND_K_MAX = 8192          # use the expanded-weight MXU backbone iff C*S <= this


def _round_up(x, m):
    return ((x + m - 1) // m) * m


# ----------------------------------------------------------------------------
# Fused Pallas kernel: all modalities + fused head, one body, one wide output.
# ----------------------------------------------------------------------------
def _make_fused_kernel(modes, use_fused, ncp):
    """modes: tuple of 'mxu' | 'pool' per present modality (static).

    Ref order: per modality (x, w1, b1, wh, bh), then (wf_stacked, bf) if fused,
    then the single wide output [bt, n_out*ncp].
    """
    n_mod = len(modes)
    n_in = 5 * n_mod + (2 if use_fused else 0)

    def kernel(*refs):
        in_refs = refs[:n_in]
        out_ref = refs[n_in]
        feats = []
        for i, mode in enumerate(modes):
            x_ref, w1_ref, b1_ref, wh_ref, bh_ref = in_refs[5 * i:5 * i + 5]
            if mode == "mxu":
                # Backbone as one lane-dense MXU contraction: the global-average
                # pool's 1/S and the Linear are folded into W1_expanded[C*S, F_pad].
                h = jnp.dot(x_ref[...], w1_ref[...],
                            preferred_element_type=jnp.float32) + b1_ref[...]
            else:
                # Fallback for very large C*S (expanded weight would not fit):
                # lane-axis pool then a small [C, F_pad] matmul (1/S folded in w1).
                pooled = jnp.sum(x_ref[...].astype(jnp.float32), axis=-1)
                h = jnp.dot(pooled, w1_ref[...],
                            preferred_element_type=jnp.float32) + b1_ref[...]
            feat = jnp.maximum(h, 0.0)                       # [bt, F_pad] in vregs
            feats.append(feat)
            # Per-modality head -> its 128-lane slice of the wide output.
            out_ref[:, i * ncp:(i + 1) * ncp] = (
                jnp.dot(feat, wh_ref[...], preferred_element_type=jnp.float32)
                + bh_ref[...])

        if use_fused:
            wf_ref = in_refs[5 * n_mod]
            bf_ref = in_refs[5 * n_mod + 1]
            fcat = feats[0] if n_mod == 1 else jnp.concatenate(feats, axis=-1)
            out_ref[:, n_mod * ncp:(n_mod + 1) * ncp] = (
                jnp.dot(fcat, wf_ref[...], preferred_element_type=jnp.float32)
                + bf_ref[...])

    return kernel


# ----------------------------------------------------------------------------
# Helpers
# ----------------------------------------------------------------------------
def _cross_entropy(scores, labels):
    logp = jax.nn.log_softmax(scores, axis=-1)
    return -jnp.mean(jnp.take_along_axis(logp, labels[:, None], axis=-1))


def _vmem_limit_bytes():
    """~72% of physical VMEM (v5e/v6e: ~92 MiB of 128; v7x: ~46 MiB of 64/TC)."""
    cap = 64 * 1024 * 1024
    try:
        info = pltpu.get_tpu_info()
        cap = int(getattr(info, "vmem_capacity_bytes", cap) or cap)
    except Exception:
        pass
    return max(32 * 1024 * 1024, int(cap * 0.72))


# ----------------------------------------------------------------------------
# Module-equivalent wrapper
# ----------------------------------------------------------------------------
class DynamicMultimodalModuleJAX:
    """JAX/Pallas re-implementation of DynamicMultimodalModule.forward."""

    def __init__(self, support_modality_names, multimodal_nets_configs,
                 is_fused_head=True, seed=0, x_compute_dtype=jnp.bfloat16):
        self.support_modality_names = list(support_modality_names)
        self.support_nets = [m + "_model" for m in self.support_modality_names]
        self.is_fused_head = is_fused_head
        assert all(s in multimodal_nets_configs for s in self.support_nets)

        self._x_dtype = jnp.dtype(x_compute_dtype)
        key = jax.random.PRNGKey(seed)
        self.params = {}
        self.modality_fea_dims_mapper = {}
        self.num_classes = None
        self.nc_pad = None

        for modality_name, net_name in zip(self.support_modality_names,
                                           self.support_nets):
            cfg = multimodal_nets_configs[net_name]
            c_in = cfg["in_channels"]
            fea_dim = cfg["cls_head"]["in_channels"]
            nc = cfg["cls_head"]["num_classes"]
            self.num_classes = nc
            self.nc_pad = _round_up(nc, _LANE)
            self.modality_fea_dims_mapper[modality_name] = fea_dim
            fpad = max(_round_up(fea_dim, _LANE), _LANE)

            key, k1, k2 = jax.random.split(key, 3)
            w1 = (jax.random.normal(k1, (c_in, fea_dim), jnp.float32)
                  * (1.0 / math.sqrt(c_in)))
            wh = (jax.random.normal(k2, (fea_dim, nc), jnp.float32)
                  * (1.0 / math.sqrt(fea_dim)))
            wh_pad = jnp.zeros((fpad, self.nc_pad), jnp.float32)
            wh_pad = wh_pad.at[:fea_dim, :nc].set(wh)
            self.params[modality_name] = {
                "w1": w1, "wh": wh, "fpad": fpad,
                "b1_pad": jnp.zeros((1, fpad), jnp.float32),
                "wh_pad": wh_pad,
                "bh_pad": jnp.zeros((1, self.nc_pad), jnp.float32),
            }

        self._fused_chunks = {}
        self.fused_w_full = None
        if is_fused_head:
            fuse_cfg = multimodal_nets_configs["fuse_model"]
            if "modalities_feature_dim" in fuse_cfg:
                self.modality_fea_dims_mapper.update(
                    fuse_cfg["modalities_feature_dim"])
            fused_dim = sum(self.modality_fea_dims_mapper[m]
                            for m in self.support_modality_names)
            nc = fuse_cfg["cls_head"]["num_classes"]
            key, kf = jax.random.split(key)
            w = (jax.random.normal(kf, (fused_dim, nc), jnp.float32)
                 * (1.0 / math.sqrt(fused_dim)))
            self.fused_w_full = w
            # Pre-split W_fused row-wise per supported modality (padded to the
            # modality's F_pad / NC_pad); a missing modality contributes zero in
            # the reference concat so skipping its block is exact.
            off = 0
            for m in self.support_modality_names:
                fd = self.modality_fea_dims_mapper[m]
                fpad = self.params[m]["fpad"]
                chunk = jnp.zeros((fpad, self.nc_pad), jnp.float32)
                chunk = chunk.at[:fd, :nc].set(w[off:off + fd])
                self._fused_chunks[m] = chunk
                off += fd
            self.fused_b_pad = jnp.zeros((1, self.nc_pad), jnp.float32)

        self._vmem_limit = _vmem_limit_bytes()
        self._prep_cache = {}        # (modality, C, S) -> (mode, prepared w1)
        self._fused_cache = {}       # tuple(present) -> stacked W_fused
        self._jit_core = jax.jit(
            self._forward_core,
            static_argnames=("modes", "bt", "nc", "ncp", "use_fused",
                             "compute_loss"))

    # ------------------------------------------------------------------ #
    # Weight preparation (hoisted out of the jitted forward, cached).
    # ------------------------------------------------------------------ #
    def _prepared_backbone(self, m, c, s):
        key = (m, c, s)
        if key in self._prep_cache:
            return self._prep_cache[key]
        p = self.params[m]
        fpad = p["fpad"]
        w1_pad = jnp.zeros((c, fpad), jnp.float32).at[:, :p["w1"].shape[1]].set(p["w1"])
        w1_pad = w1_pad * jnp.float32(1.0 / s)        # fold the average pool's 1/S
        if c * s <= _EXPAND_K_MAX:
            # Expanded backbone weight: row c*S+s_idx == w1[c]/S.  bf16 to match x.
            w1_exp = jnp.repeat(w1_pad, s, axis=0).astype(self._x_dtype)
            entry = ("mxu", jax.block_until_ready(w1_exp))
        else:
            entry = ("pool", jax.block_until_ready(w1_pad))
        self._prep_cache[key] = entry
        return entry

    def _prepared_fused(self, present):
        if present in self._fused_cache:
            return self._fused_cache[present]
        chunks = [self._fused_chunks[m] for m in present]
        wf = chunks[0] if len(chunks) == 1 else jnp.concatenate(chunks, axis=0)
        wf = jax.block_until_ready(wf)
        self._fused_cache[present] = wf
        return wf

    # ------------------------------------------------------------------ #
    # Batch-tile selection with full VMEM accounting.
    # ------------------------------------------------------------------ #
    def _choose_batch_tile(self, xs, modes, n_out, weights):
        batch = xs[0].shape[0]
        budget = int(self._vmem_limit * 0.9)
        fixed = sum(2 * int(w.size) * w.dtype.itemsize for w in weights)  # 2x: dbl-buf
        fixed += 2 * 1024 * 1024                                          # slack (temps)
        per_row = 0
        x_itemsize = self._x_dtype.itemsize
        for x, mode in zip(xs, modes):
            k = math.prod(x.shape[1:])
            per_row += 2 * k * x_itemsize                 # double-buffered x tile
            per_row += _LANE * 4                          # feat temp (f32)
        per_row += 2 * n_out * self.nc_pad * 4            # double-buffered wide output
        avail = max(budget - fixed, per_row)
        bt = max(1, avail // per_row)
        if bt >= batch:
            bt = batch
            if batch >= 16:
                # Keep >=2 grid steps so v7x's two TensorCores both get work.
                bt = min(batch, _round_up(-(-batch // 2), 8))
        else:
            bt = max(8, (bt // 8) * 8)                    # (8,128) sublane alignment
            bt = min(bt, batch)
        return int(bt)

    # ------------------------------------------------------------------ #
    # Jitted core: build + run the single fused pallas_call, slice, loss.
    # ------------------------------------------------------------------ #
    def _forward_core(self, xs, weights, label, *, modes, bt, nc, ncp,
                      use_fused, compute_loss):
        n_mod = len(modes)
        n_out = n_mod + (1 if use_fused else 0)
        batch = xs[0].shape[0]
        num_tiles = pl.cdiv(batch, bt)

        kernel_args, in_specs = [], []
        wi = 0
        for mode, x in zip(modes, xs):
            if mode == "mxu":
                xk = jnp.reshape(x, (batch, -1)).astype(self._x_dtype)
                in_specs.append(pl.BlockSpec((bt, xk.shape[1]),
                                             lambda t: (t, 0)))
            else:
                xk = jnp.reshape(x, (batch, x.shape[1], -1)).astype(self._x_dtype)
                in_specs.append(pl.BlockSpec((bt, xk.shape[1], xk.shape[2]),
                                             lambda t: (t, 0, 0)))
            kernel_args.append(xk)
            for _ in range(4):                        # w1, b1, wh, bh (all 2-D)
                w = weights[wi]; wi += 1
                kernel_args.append(w)
                in_specs.append(pl.BlockSpec(w.shape, lambda t: (0, 0)))
        if use_fused:
            for _ in range(2):                        # stacked wf, bf
                w = weights[wi]; wi += 1
                kernel_args.append(w)
                in_specs.append(pl.BlockSpec(w.shape, lambda t: (0, 0)))

        out = pl.pallas_call(
            _make_fused_kernel(modes, use_fused, ncp),
            grid=(num_tiles,),
            out_shape=jax.ShapeDtypeStruct((batch, n_out * ncp), jnp.float32),
            in_specs=in_specs,
            out_specs=pl.BlockSpec((bt, n_out * ncp), lambda t: (t, 0)),
            compiler_params=pltpu.CompilerParams(
                dimension_semantics=("parallel",),     # batch grid -> 2 TCs on v7x
                vmem_limit_bytes=self._vmem_limit),
        )(*kernel_args)

        scores = tuple(out[:, i * ncp:i * ncp + nc] for i in range(n_out))
        if compute_loss:
            losses = tuple(_cross_entropy(s, label) for s in scores)
        else:
            losses = tuple(None for _ in range(n_out))
        return scores, losses

    # ------------------------------------------------------------------ #
    def forward(self, data_container, label=None, return_loss=True):
        compute_loss = bool(return_loss) and (label is not None)
        present = list(data_container.keys())
        xs = tuple(data_container[m] for m in present)

        modes, weights = [], []
        for m, x in zip(present, xs):
            c = x.shape[1]
            s = math.prod(x.shape[2:]) if len(x.shape) > 2 else 1
            mode, w1p = self._prepared_backbone(m, c, s)
            modes.append(mode)
            p = self.params[m]
            weights += [w1p, p["b1_pad"], p["wh_pad"], p["bh_pad"]]
        if self.is_fused_head:
            wf = self._prepared_fused(tuple(present))
            weights += [wf, self.fused_b_pad]
        modes = tuple(modes)
        n_out = len(present) + (1 if self.is_fused_head else 0)
        bt = self._choose_batch_tile(xs, modes, n_out, weights)

        scores, losses = self._jit_core(
            xs, tuple(weights), label if compute_loss else None,
            modes=modes, bt=bt, nc=self.num_classes, ncp=self.nc_pad,
            use_fused=self.is_fused_head, compute_loss=compute_loss)

        names = present + (["fused"] if self.is_fused_head else [])
        pred_scores = dict(zip(names, scores))
        losses_d = dict(zip(names, losses))
        return pred_scores, losses_d


# ----------------------------------------------------------------------------
# Plain-JAX reference (for a correctness sanity check in the demo)
# ----------------------------------------------------------------------------
def _reference_scores(module, data):
    feats, scores = {}, {}
    for m, x in data.items():
        p = module.params[m]
        xf = jnp.reshape(x, (x.shape[0], x.shape[1], -1)).astype(jnp.float32)
        pooled = jnp.mean(xf, axis=-1)
        feat = jnp.maximum(pooled @ p["w1"], 0.0)            # biases are zero
        feats[m] = feat
        scores[m] = feat @ p["wh"]
    if module.is_fused_head:
        batch = next(iter(data.values())).shape[0]
        cat = []
        for m in module.support_modality_names:
            fd = module.modality_fea_dims_mapper[m]
            cat.append(feats[m] if m in feats
                       else jnp.zeros((batch, fd), jnp.float32))
        scores["fused"] = jnp.concatenate(cat, axis=-1) @ module.fused_w_full
    return scores


# ----------------------------------------------------------------------------
# Demo
# ----------------------------------------------------------------------------
if __name__ == "__main__":
    B, NUM_CLASSES = 2, 10
    support_modality_names = ["rgb", "audio", "text"]
    configs = {
        "rgb_model":   {"in_channels": 4,
                        "cls_head": {"in_channels": 32, "num_classes": NUM_CLASSES}},
        "audio_model": {"in_channels": 4,
                        "cls_head": {"in_channels": 16, "num_classes": NUM_CLASSES}},
        "text_model":  {"in_channels": 32,
                        "cls_head": {"in_channels": 24, "num_classes": NUM_CLASSES}},
        "fuse_model":  {"cls_head": {"num_classes": NUM_CLASSES},
                        "modalities_feature_dim": {"rgb": 32, "audio": 16, "text": 24}},
    }

    module = DynamicMultimodalModuleJAX(support_modality_names, configs,
                                        is_fused_head=True, seed=0)

    key = jax.random.PRNGKey(0)
    k_rgb, k_aud, k_txt, k_lbl = jax.random.split(key, 4)
    data_container = {
        "rgb":   jax.random.normal(k_rgb, (B, 4, 16, 16), jnp.float32),  # NCHW
        "audio": jax.random.normal(k_aud, (B, 4, 64), jnp.float32),      # (B, C, T)
        "text":  jax.random.normal(k_txt, (B, 32, 8), jnp.float32),      # (B, hidden, seq)
    }
    label = jax.random.randint(k_lbl, (B,), 0, NUM_CLASSES)

    pred_scores, losses = module.forward(data_container, label=label,
                                         return_loss=True)

    for name, score in pred_scores.items():
        jax.block_until_ready(score)
        assert score.shape == (B, NUM_CLASSES), (name, score.shape)
    for name, loss in losses.items():
        if loss is not None:
            jax.block_until_ready(loss)

    # Correctness check against a pure-JAX f32 reference (tolerance covers the
    # bf16 input streaming + MXU f32 accumulation vs XLA default precision).
    ref = _reference_scores(module, data_container)
    for name, score in pred_scores.items():
        assert jnp.allclose(score, ref[name], rtol=5e-2, atol=1e-2), name

    print("KERNEL_OK")
</pallas_src>

<mosaic_0001>
module attributes {stable_mosaic.version = 11 : i64} {
  func.func @kernel(%arg0: i32, %arg1: memref<2x1024xbf16, #tpu.memory_space<vmem>>, %arg2: memref<1024x128xbf16, #tpu.memory_space<vmem>>, %arg3: memref<1x128xf32, #tpu.memory_space<vmem>>, %arg4: memref<128x128xf32, #tpu.memory_space<vmem>>, %arg5: memref<1x128xf32, #tpu.memory_space<vmem>>, %arg6: memref<2x256xbf16, #tpu.memory_space<vmem>>, %arg7: memref<256x128xbf16, #tpu.memory_space<vmem>>, %arg8: memref<1x128xf32, #tpu.memory_space<vmem>>, %arg9: memref<128x128xf32, #tpu.memory_space<vmem>>, %arg10: memref<1x128xf32, #tpu.memory_space<vmem>>, %arg11: memref<2x256xbf16, #tpu.memory_space<vmem>>, %arg12: memref<256x128xbf16, #tpu.memory_space<vmem>>, %arg13: memref<1x128xf32, #tpu.memory_space<vmem>>, %arg14: memref<128x128xf32, #tpu.memory_space<vmem>>, %arg15: memref<1x128xf32, #tpu.memory_space<vmem>>, %arg16: memref<384x128xf32, #tpu.memory_space<vmem>>, %arg17: memref<1x128xf32, #tpu.memory_space<vmem>>, %arg18: memref<2x512xf32, #tpu.memory_space<vmem>>) attributes {dimension_semantics = [#tpu.dimension_semantics<parallel>], iteration_bounds = array<i64: 1>, scalar_prefetch = 0 : i64, scratch_operands = 0 : i64, tpu.core_type = #tpu.core_type<tc>, window_params = [{transform_indices = @transform_0, window_bounds = array<i64: 2, 1024>}, {pipeline_mode = #tpu.pipeline_mode<synchronous>, transform_indices = @transform_1, window_bounds = array<i64: 1024, 128>}, {pipeline_mode = #tpu.pipeline_mode<synchronous>, transform_indices = @transform_2, window_bounds = array<i64: 1, 128>}, {pipeline_mode = #tpu.pipeline_mode<synchronous>, transform_indices = @transform_3, window_bounds = array<i64: 128, 128>}, {pipeline_mode = #tpu.pipeline_mode<synchronous>, transform_indices = @transform_4, window_bounds = array<i64: 1, 128>}, {transform_indices = @transform_5, window_bounds = array<i64: 2, 256>}, {pipeline_mode = #tpu.pipeline_mode<synchronous>, transform_indices = @transform_6, window_bounds = array<i64: 256, 128>}, {pipeline_mode = #tpu.pipeline_mode<synchronous>, transform_indices = @transform_7, window_bounds = array<i64: 1, 128>}, {pipeline_mode = #tpu.pipeline_mode<synchronous>, transform_indices = @transform_8, window_bounds = array<i64: 128, 128>}, {pipeline_mode = #tpu.pipeline_mode<synchronous>, transform_indices = @transform_9, window_bounds = array<i64: 1, 128>}, {transform_indices = @transform_10, window_bounds = array<i64: 2, 256>}, {pipeline_mode = #tpu.pipeline_mode<synchronous>, transform_indices = @transform_11, window_bounds = array<i64: 256, 128>}, {pipeline_mode = #tpu.pipeline_mode<synchronous>, transform_indices = @transform_12, window_bounds = array<i64: 1, 128>}, {pipeline_mode = #tpu.pipeline_mode<synchronous>, transform_indices = @transform_13, window_bounds = array<i64: 128, 128>}, {pipeline_mode = #tpu.pipeline_mode<synchronous>, transform_indices = @transform_14, window_bounds = array<i64: 1, 128>}, {pipeline_mode = #tpu.pipeline_mode<synchronous>, transform_indices = @transform_15, window_bounds = array<i64: 384, 128>}, {pipeline_mode = #tpu.pipeline_mode<synchronous>, transform_indices = @transform_16, window_bounds = array<i64: 1, 128>}, {transform_indices = @transform_17, window_bounds = array<i64: 2, 512>}]} {
    %c0 = arith.constant 0 : index
    %c0_0 = arith.constant 0 : index
    %0 = vector.load %arg1[%c0, %c0_0] : memref<2x1024xbf16, #tpu.memory_space<vmem>>, vector<2x1024xbf16>
    %c0_1 = arith.constant 0 : index
    %c0_2 = arith.constant 0 : index
    %1 = vector.load %arg2[%c0_1, %c0_2] : memref<1024x128xbf16, #tpu.memory_space<vmem>>, vector<1024x128xbf16>
    %cst = arith.constant dense<0.000000e+00> : vector<2x128xf32>
    %2 = tpu.matmul %0, %1, %cst {dimension_numbers = #tpu.dot_dimension_numbers<[1], [0], [0], [1], [0, 0, 1, 1], [], []>} : vector<2x1024xbf16>, vector<1024x128xbf16>, vector<2x128xf32> -> vector<2x128xf32>
    %c0_3 = arith.constant 0 : index
    %c0_4 = arith.constant 0 : index
    %3 = vector.load %arg3[%c0_3, %c0_4] : memref<1x128xf32, #tpu.memory_space<vmem>>, vector<1x128xf32>
    %4 = vector.broadcast %3 : vector<1x128xf32> to vector<2x128xf32>
    %5 = arith.addf %2, %4 : vector<2x128xf32>
    %cst_5 = arith.constant 0.000000e+00 : f32
    %6 = vector.broadcast %cst_5 : f32 to vector<2x128xf32>
    %7 = arith.maximumf %5, %6 : vector<2x128xf32>
    %c0_6 = arith.constant 0 : index
    %c0_7 = arith.constant 0 : index
    %8 = vector.load %arg4[%c0_6, %c0_7] : memref<128x128xf32, #tpu.memory_space<vmem>>, vector<128x128xf32>
    %cst_8 = arith.constant dense<0.000000e+00> : vector<2x128xf32>
    %9 = tpu.matmul %7, %8, %cst_8 {dimension_numbers = #tpu.dot_dimension_numbers<[1], [0], [0], [1], [0, 0, 1, 1], [], []>} : vector<2x128xf32>, vector<128x128xf32>, vector<2x128xf32> -> vector<2x128xf32>
    %c0_9 = arith.constant 0 : index
    %c0_10 = arith.constant 0 : index
    %10 = vector.load %arg5[%c0_9, %c0_10] : memref<1x128xf32, #tpu.memory_space<vmem>>, vector<1x128xf32>
    %11 = vector.broadcast %10 : vector<1x128xf32> to vector<2x128xf32>
    %12 = arith.addf %9, %11 : vector<2x128xf32>
    %c0_11 = arith.constant 0 : index
    %c0_12 = arith.constant 0 : index
    %13 = vector.load %arg18[%c0_11, %c0_12] : memref<2x512xf32, #tpu.memory_space<vmem>>, vector<2x128xf32>
    tpu.vector_store %arg18[%c0_11, %c0_12], %12 {strides = array<i32>} : memref<2x512xf32, #tpu.memory_space<vmem>>, vector<2x128xf32>,
    %c0_13 = arith.constant 0 : index
    %c0_14 = arith.constant 0 : index
    %14 = vector.load %arg6[%c0_13, %c0_14] : memref<2x256xbf16, #tpu.memory_space<vmem>>, vector<2x256xbf16>
    %c0_15 = arith.constant 0 : index
    %c0_16 = arith.constant 0 : index
    %15 = vector.load %arg7[%c0_15, %c0_16] : memref<256x128xbf16, #tpu.memory_space<vmem>>, vector<256x128xbf16>
    %cst_17 = arith.constant dense<0.000000e+00> : vector<2x128xf32>
    %16 = tpu.matmul %14, %15, %cst_17 {dimension_numbers = #tpu.dot_dimension_numbers<[1], [0], [0], [1], [0, 0, 1, 1], [], []>} : vector<2x256xbf16>, vector<256x128xbf16>, vector<2x128xf32> -> vector<2x128xf32>
    %c0_18 = arith.constant 0 : index
    %c0_19 = arith.constant 0 : index
    %17 = vector.load %arg8[%c0_18, %c0_19] : memref<1x128xf32, #tpu.memory_space<vmem>>, vector<1x128xf32>
    %18 = vector.broadcast %17 : vector<1x128xf32> to vector<2x128xf32>
    %19 = arith.addf %16, %18 : vector<2x128xf32>
    %cst_20 = arith.constant 0.000000e+00 : f32
    %20 = vector.broadcast %cst_20 : f32 to vector<2x128xf32>
    %21 = arith.maximumf %19, %20 : vector<2x128xf32>
    %c0_21 = arith.constant 0 : index
    %c0_22 = arith.constant 0 : index
    %22 = vector.load %arg9[%c0_21, %c0_22] : memref<128x128xf32, #tpu.memory_space<vmem>>, vector<128x128xf32>
    %cst_23 = arith.constant dense<0.000000e+00> : vector<2x128xf32>
    %23 = tpu.matmul %21, %22, %cst_23 {dimension_numbers = #tpu.dot_dimension_numbers<[1], [0], [0], [1], [0, 0, 1, 1], [], []>} : vector<2x128xf32>, vector<128x128xf32>, vector<2x128xf32> -> vector<2x128xf32>
    %c0_24 = arith.constant 0 : index
    %c0_25 = arith.constant 0 : index
    %24 = vector.load %arg10[%c0_24, %c0_25] : memref<1x128xf32, #tpu.memory_space<vmem>>, vector<1x128xf32>
    %25 = vector.broadcast %24 : vector<1x128xf32> to vector<2x128xf32>
    %26 = arith.addf %23, %25 : vector<2x128xf32>
    %c0_26 = arith.constant 0 : index
    %c128 = arith.constant 128 : index
    %27 = vector.load %arg18[%c0_26, %c128] : memref<2x512xf32, #tpu.memory_space<vmem>>, vector<2x128xf32>
    tpu.vector_store %arg18[%c0_26, %c128], %26 {strides = array<i32>} : memref<2x512xf32, #tpu.memory_space<vmem>>, vector<2x128xf32>,
    %c0_27 = arith.constant 0 : index
    %c0_28 = arith.constant 0 : index
    %28 = vector.load %arg11[%c0_27, %c0_28] : memref<2x256xbf16, #tpu.memory_space<vmem>>, vector<2x256xbf16>
    %c0_29 = arith.constant 0 : index
    %c0_30 = arith.constant 0 : index
    %29 = vector.load %arg12[%c0_29, %c0_30] : memref<256x128xbf16, #tpu.memory_space<vmem>>, vector<256x128xbf16>
    %cst_31 = arith.constant dense<0.000000e+00> : vector<2x128xf32>
    %30 = tpu.matmul %28, %29, %cst_31 {dimension_numbers = #tpu.dot_dimension_numbers<[1], [0], [0], [1], [0, 0, 1, 1], [], []>} : vector<2x256xbf16>, vector<256x128xbf16>, vector<2x128xf32> -> vector<2x128xf32>
    %c0_32 = arith.constant 0 : index
    %c0_33 = arith.constant 0 : index
    %31 = vector.load %arg13[%c0_32, %c0_33] : memref<1x128xf32, #tpu.memory_space<vmem>>, vector<1x128xf32>
    %32 = vector.broadcast %31 : vector<1x128xf32> to vector<2x128xf32>
    %33 = arith.addf %30, %32 : vector<2x128xf32>
    %cst_34 = arith.constant 0.000000e+00 : f32
    %34 = vector.broadcast %cst_34 : f32 to vector<2x128xf32>
    %35 = arith.maximumf %33, %34 : vector<2x128xf32>
    %c0_35 = arith.constant 0 : index
    %c0_36 = arith.constant 0 : index
    %36 = vector.load %arg14[%c0_35, %c0_36] : memref<128x128xf32, #tpu.memory_space<vmem>>, vector<128x128xf32>
    %cst_37 = arith.constant dense<0.000000e+00> : vector<2x128xf32>
    %37 = tpu.matmul %35, %36, %cst_37 {dimension_numbers = #tpu.dot_dimension_numbers<[1], [0], [0], [1], [0, 0, 1, 1], [], []>} : vector<2x128xf32>, vector<128x128xf32>, vector<2x128xf32> -> vector<2x128xf32>
    %c0_38 = arith.constant 0 : index
    %c0_39 = arith.constant 0 : index
    %38 = vector.load %arg15[%c0_38, %c0_39] : memref<1x128xf32, #tpu.memory_space<vmem>>, vector<1x128xf32>
    %39 = vector.broadcast %38 : vector<1x128xf32> to vector<2x128xf32>
    %40 = arith.addf %37, %39 : vector<2x128xf32>
    %c0_40 = arith.constant 0 : index
    %c256 = arith.constant 256 : index
    %41 = vector.load %arg18[%c0_40, %c256] : memref<2x512xf32, #tpu.memory_space<vmem>>, vector<2x128xf32>
    tpu.vector_store %arg18[%c0_40, %c256], %40 {strides = array<i32>} : memref<2x512xf32, #tpu.memory_space<vmem>>, vector<2x128xf32>,
    %42 = tpu.concatenate %7, %21, %35 in 1 : vector<2x128xf32>, vector<2x128xf32>, vector<2x128xf32> -> vector<2x384xf32>
    %c0_41 = arith.constant 0 : index
    %c0_42 = arith.constant 0 : index
    %43 = vector.load %arg16[%c0_41, %c0_42] : memref<384x128xf32, #tpu.memory_space<vmem>>, vector<384x128xf32>
    %cst_43 = arith.constant dense<0.000000e+00> : vector<2x128xf32>
    %44 = tpu.matmul %42, %43, %cst_43 {dimension_numbers = #tpu.dot_dimension_numbers<[1], [0], [0], [1], [0, 0, 1, 1], [], []>} : vector<2x384xf32>, vector<384x128xf32>, vector<2x128xf32> -> vector<2x128xf32>
    %c0_44 = arith.constant 0 : index
    %c0_45 = arith.constant 0 : index
    %45 = vector.load %arg17[%c0_44, %c0_45] : memref<1x128xf32, #tpu.memory_space<vmem>>, vector<1x128xf32>
    %46 = vector.broadcast %45 : vector<1x128xf32> to vector<2x128xf32>
    %47 = arith.addf %44, %46 : vector<2x128xf32>
    %c0_46 = arith.constant 0 : index
    %c384 = arith.constant 384 : index
    %48 = vector.load %arg18[%c0_46, %c384] : memref<2x512xf32, #tpu.memory_space<vmem>>, vector<2x128xf32>
    tpu.vector_store %arg18[%c0_46, %c384], %47 {strides = array<i32>} : memref<2x512xf32, #tpu.memory_space<vmem>>, vector<2x128xf32>,
    return
  }
  func.func @transform_0(%arg0: i32) -> (i32, i32) {
    %c0_i32 = arith.constant 0 : i32
    %c0_i32_0 = arith.constant 0 : i32
    return %arg0, %c0_i32 : i32, i32
  }
  func.func @transform_1(%arg0: i32) -> (i32, i32) {
    %c0_i32 = arith.constant 0 : i32
    %c0_i32_0 = arith.constant 0 : i32
    %c0_i32_1 = arith.constant 0 : i32
    return %c0_i32, %c0_i32_0 : i32, i32
  }
  func.func @transform_2(%arg0: i32) -> (i32, i32) {
    %c0_i32 = arith.constant 0 : i32
    %c0_i32_0 = arith.constant 0 : i32
    %c0_i32_1 = arith.constant 0 : i32
    return %c0_i32, %c0_i32_0 : i32, i32
  }
  func.func @transform_3(%arg0: i32) -> (i32, i32) {
    %c0_i32 = arith.constant 0 : i32
    %c0_i32_0 = arith.constant 0 : i32
    %c0_i32_1 = arith.constant 0 : i32
    return %c0_i32, %c0_i32_0 : i32, i32
  }
  func.func @transform_4(%arg0: i32) -> (i32, i32) {
    %c0_i32 = arith.constant 0 : i32
    %c0_i32_0 = arith.constant 0 : i32
    %c0_i32_1 = arith.constant 0 : i32
    return %c0_i32, %c0_i32_0 : i32, i32
  }
  func.func @transform_5(%arg0: i32) -> (i32, i32) {
    %c0_i32 = arith.constant 0 : i32
    %c0_i32_0 = arith.constant 0 : i32
    return %arg0, %c0_i32 : i32, i32
  }
  func.func @transform_6(%arg0: i32) -> (i32, i32) {
    %c0_i32 = arith.constant 0 : i32
    %c0_i32_0 = arith.constant 0 : i32
    %c0_i32_1 = arith.constant 0 : i32
    return %c0_i32, %c0_i32_0 : i32, i32
  }
  func.func @transform_7(%arg0: i32) -> (i32, i32) {
    %c0_i32 = arith.constant 0 : i32
    %c0_i32_0 = arith.constant 0 : i32
    %c0_i32_1 = arith.constant 0 : i32
    return %c0_i32, %c0_i32_0 : i32, i32
  }
  func.func @transform_8(%arg0: i32) -> (i32, i32) {
    %c0_i32 = arith.constant 0 : i32
    %c0_i32_0 = arith.constant 0 : i32
    %c0_i32_1 = arith.constant 0 : i32
    return %c0_i32, %c0_i32_0 : i32, i32
  }
  func.func @transform_9(%arg0: i32) -> (i32, i32) {
    %c0_i32 = arith.constant 0 : i32
    %c0_i32_0 = arith.constant 0 : i32
    %c0_i32_1 = arith.constant 0 : i32
    return %c0_i32, %c0_i32_0 : i32, i32
  }
  func.func @transform_10(%arg0: i32) -> (i32, i32) {
    %c0_i32 = arith.constant 0 : i32
    %c0_i32_0 = arith.constant 0 : i32
    return %arg0, %c0_i32 : i32, i32
  }
  func.func @transform_11(%arg0: i32) -> (i32, i32) {
    %c0_i32 = arith.constant 0 : i32
    %c0_i32_0 = arith.constant 0 : i32
    %c0_i32_1 = arith.constant 0 : i32
    return %c0_i32, %c0_i32_0 : i32, i32
  }
  func.func @transform_12(%arg0: i32) -> (i32, i32) {
    %c0_i32 = arith.constant 0 : i32
    %c0_i32_0 = arith.constant 0 : i32
    %c0_i32_1 = arith.constant 0 : i32
    return %c0_i32, %c0_i32_0 : i32, i32
  }
  func.func @transform_13(%arg0: i32) -> (i32, i32) {
    %c0_i32 = arith.constant 0 : i32
    %c0_i32_0 = arith.constant 0 : i32
    %c0_i32_1 = arith.constant 0 : i32
    return %c0_i32, %c0_i32_0 : i32, i32
  }
  func.func @transform_14(%arg0: i32) -> (i32, i32) {
    %c0_i32 = arith.constant 0 : i32
    %c0_i32_0 = arith.constant 0 : i32
    %c0_i32_1 = arith.constant 0 : i32
    return %c0_i32, %c0_i32_0 : i32, i32
  }
  func.func @transform_15(%arg0: i32) -> (i32, i32) {
    %c0_i32 = arith.constant 0 : i32
    %c0_i32_0 = arith.constant 0 : i32
    %c0_i32_1 = arith.constant 0 : i32
    return %c0_i32, %c0_i32_0 : i32, i32
  }
  func.func @transform_16(%arg0: i32) -> (i32, i32) {
    %c0_i32 = arith.constant 0 : i32
    %c0_i32_0 = arith.constant 0 : i32
    %c0_i32_1 = arith.constant 0 : i32
    return %c0_i32, %c0_i32_0 : i32, i32
  }
  func.func @transform_17(%arg0: i32) -> (i32, i32) {
    %c0_i32 = arith.constant 0 : i32
    %c0_i32_0 = arith.constant 0 : i32
    return %arg0, %c0_i32 : i32, i32
  }
}

</mosaic_0001>

<bundles_post_ra>
// kernel: _forward_core.1
= control target key start
LH: loop header
LB: loop body
LE: loop exit
PB: predicated region body
PF: predicated region fallthrough
CT: control target
= control target key end

     0   :  { %s2251_s0 = inlined_call_operand.vmem [shape: bf16[2,1024], index: 0, kind: input, shape index: {}]   ;;  %s2252_s1 = inlined_call_operand.hbm [shape: bf16[1024,128], index: 1, kind: input, shape index: {}]   ;;  %s2253_s2 = inlined_call_operand.vmem [shape: f32[1,128], index: 2, kind: input, shape index: {}]   ;;  %s2254_s3 = inlined_call_operand.vmem [shape: f32[128,128], index: 3, kind: input, shape index: {}]   ;;  %s2255_s4 = inlined_call_operand.vmem [shape: f32[1,128], index: 4, kind: input, shape index: {}]   ;;  %s2256_s5 = inlined_call_operand.vmem [shape: bf16[2,256], index: 5, kind: input, shape index: {}]   ;;  %s2257_s6 = inlined_call_operand.vmem [shape: bf16[256,128], index: 6, kind: input, shape index: {}]   ;;  %s2258_s7 = inlined_call_operand.vmem [shape: f32[1,128], index: 7, kind: input, shape index: {}]   ;;  %s2259_s8 = inlined_call_operand.hbm [shape: f32[128,128], index: 8, kind: input, shape index: {}]   ;;  %s2260_s9 = inlined_call_operand.vmem [shape: f32[1,128], index: 9, kind: input, shape index: {}]   ;;  %s2261_s10 = inlined_call_operand.vmem [shape: bf16[2,256], index: 10, kind: input, shape index: {}]   ;;  %s2262_s11 = inlined_call_operand.hbm [shape: bf16[256,128], index: 11, kind: input, shape index: {}]   ;;  %s2263_s12 = inlined_call_operand.vmem [shape: f32[1,128], index: 12, kind: input, shape index: {}]   ;;  %s2264_s13 = inlined_call_operand.hbm [shape: f32[128,128], index: 13, kind: input, shape index: {}]   ;;  %s2265_s14 = inlined_call_operand.vmem [shape: f32[1,128], index: 14, kind: input, shape index: {}]   ;;  %s2266_s15 = inlined_call_operand.hbm [shape: f32[384,128], index: 15, kind: input, shape index: {}]   ;;  %s2267_s16 = inlined_call_operand.vmem [shape: f32[1,128], index: 16, kind: input, shape index: {}]   ;;  %s2268_s17 = inlined_call_operand.vmem [shape: f32[2,512], index: 17, kind: output, shape index: {}]  }
   0x1   :  { %2269 = sst [smem:[#allocation13_spill]] %s2251_s0 }
   0x2   :  { %2270 = sst [smem:[#allocation14_spill]] %s2252_s1 }
   0x3   :  { %22 = vsyncpa [#allocation3], 0 }
   0x4   :  { %23 = vsyncpa [#allocation5], 0  ;;  %s56_s26 = sshll.u32 %s2259_s8, 4  ;;  %s57_s26 = int_to_ptr.hbm [resolvable:$true] %s56_s26 }
   0x5   :  { %24 = vsyncpa [#allocation8], 0  ;;  %s1971_s27 = smov [#allocation4]   ;;  %s88_s30 = sshll.u32 %s2264_s13, 4  ;;  %s89_s30 = int_to_ptr.hbm [resolvable:$true] %s88_s30 }
   0x6   :  { %s58_s28 = sshll.u32 %s1971_s27, 4  ;;  %s1972_s18 = smov 128   ;;  %s59_s28 = int_to_ptr.vmem [resolvable:$true] %s58_s28 }
   0x7   :  { %s1973_s19 = smov 8   ;;  %s1974_s1 = smov [#allocation7]  }
   0x8   :  { %64 = dma.hbm_to_vmem [thread:$0]  %s57_s26, 2048, %s59_s28, [#allocation5], %s1972_s18, %s1972_s18, %s1973_s19  }
   0x9   :  { %s90_s20 = sshll.u32 %s1974_s1, 4  ;;  %s2271_s22 = sld [smem:[#allocation14_spill]]  ;;  %s91_s20 = int_to_ptr.vmem [resolvable:$true] %s90_s20 }
   0xa   :  { %96 = dma.hbm_to_vmem [thread:$0]  %s89_s30, 2048, %s91_s20, [#allocation8], %s1972_s18, %s1972_s18, %s1973_s19  }
   0xb   :  { %s1975_s13 = smov [#allocation2]   ;;  %s73_s26 = sshll.u32 %s2262_s11, 4  ;;  %s74_s26 = int_to_ptr.hbm [resolvable:$true] %s73_s26 }
   0xc   :  { %s33_s24 = sshll.u32 %s1975_s13, 4  ;;  %s1976_s28 = smov 64   ;;  %s34_s24 = int_to_ptr.vmem [resolvable:$true] %s33_s24 }
   0xd   :  { %s1977_s29 = smov 4   ;;  %s1978_s0 = smov [#allocation6]  }
   0xe   :  { %s75_s1 = sshll.u32 %s1978_s0, 4  ;;  %s1979_s30 = smov [#allocation9]   ;;  %s76_s1 = int_to_ptr.vmem [resolvable:$true] %s75_s1 }
   0xf   :  { %s31_s23 = sshll.u32 %s2271_s22, 4  ;;  %s103_s22 = sshll.u32 %s2266_s15, 4  ;;  %s32_s23 = int_to_ptr.hbm [resolvable:$true] %s31_s23  ;;  %s104_s22 = int_to_ptr.hbm [resolvable:$true] %s103_s22 }
  0x10   :  { %39 = dma.hbm_to_vmem [thread:$0]  %s32_s23, 8192, %s34_s24, [#allocation3], %s1976_s28, %s1976_s28, %s1977_s29  }
  0x11   :  { %81 = dma.hbm_to_vmem [thread:$0]  %s74_s26, 2048, %s76_s1, [#allocation5], %s1976_s28, %s1976_s28, %s1977_s29  }
  0x12   :  { %s105_s20 = sshll.u32 %s1979_s30, 4  ;;  %s106_s20 = int_to_ptr.vmem [resolvable:$true] %s105_s20 }
  0x13   :  { %111 = dma.hbm_to_vmem [thread:$0]  %s104_s22, 6144, %s106_s20, [#allocation8], %s1972_s18, %s1972_s18, %s1973_s19  }
  0x14   :  { %1965 = dma.done.wait [#allocation3], 8192  }
  0x15   :  { %1966 = vsyncadd [#allocation3], 4294959104 }
  0x16   :  { %1967 = dma.done.wait [#allocation5], 4096  }
  0x17   :  { %1968 = vsyncadd [#allocation5], 4294963200 }
  0x18   :  { %1969 = dma.done.wait [#allocation8], 8192  }
  0x19   :  { %1970 = vsyncadd [#allocation8], 4294959104  ;;  %v1740_v0 = vld [vmem:[#allocation2 + $0x38] sm:$0xff]  ;;  %v1739_v4 = vld [vmem:[#allocation2 + $0x30] sm:$0xff]  ;;  %s2272_s18 = sld [smem:[#allocation13_spill]] }
  0x1a   :  { %v1748_v1 = vld [vmem:[#allocation2 + $0x78] sm:$0xff]  ;;  %669 = vmatpush.bf16.msra.mxu0 %v1740_v0  ;;  %v1747_v5 = vld [vmem:[#allocation2 + $0x70] sm:$0xff]  ;;  %v1738_v8 = vld [vmem:[#allocation2 + $0x28] sm:$0xff] }
  0x1b   :  { %v1756_v2 = vld [vmem:[#allocation2 + $0xb8] sm:$0xff]  ;;  %682 = vmatpush.bf16.msra.mxu1 %v1748_v1  ;;  %v1755_v6 = vld [vmem:[#allocation2 + $0xb0] sm:$0xff]  ;;  %v1746_v9 = vld [vmem:[#allocation2 + $0x68] sm:$0xff] }
  0x1c   :  { %v1764_v3 = vld [vmem:[#allocation2 + $0xf8] sm:$0xff]  ;;  %695 = vmatpush.bf16.msra.mxu2 %v1756_v2  ;;  %v1763_v7 = vld [vmem:[#allocation2 + $0xf0] sm:$0xff]  ;;  %v1754_v10 = vld [vmem:[#allocation2 + $0xa8] sm:$0xff] }
  0x1d   :  { %708 = vmatpush.bf16.msra.mxu3 %v1764_v3  ;;  %v1762_v11 = vld [vmem:[#allocation2 + $0xe8] sm:$0xff]  ;;  %v1737_v12 = vld [vmem:[#allocation2 + $0x20] sm:$0xff]  ;;  %v1736_v17 = vld [vmem:[#allocation2 + $0x18] sm:$0xff] }
  0x1e   :  { %670 = vmatpush.bf16.msra.mxu0 %v1739_v4  ;;  %v1745_v13 = vld [vmem:[#allocation2 + $0x60] sm:$0xff]  ;;  %v1744_v18 = vld [vmem:[#allocation2 + $0x58] sm:$0xff]  ;;  %v1735_v21 = vld [vmem:[#allocation2 + $0x10] sm:$0xff] }
  0x1f   :  { %683 = vmatpush.bf16.msra.mxu1 %v1747_v5  ;;  %v1753_v14 = vld [vmem:[#allocation2 + $0xa0] sm:$0xff]  ;;  %v134_v16 = vld [vmem:[%s2272_s18] sm:$0xff]  ;;  %v1743_v22 = vld [vmem:[#allocation2 + $0x50] sm:$0xff] }
  0x20   :  { %696 = vmatpush.bf16.msra.mxu2 %v1755_v6  ;;  %v1761_v15 = vld [vmem:[#allocation2 + $0xe0] sm:$0xff]  ;;  %268 = vst [vmem:[#allocation1] ss:$9 sm:$0xff] %v134_v16  ;;  %v1752_v19 = vld [vmem:[#allocation2 + $0x98] sm:$0xff]  ;;  %v1751_v23 = vld [vmem:[#allocation2 + $0x90] sm:$0xff] }
  0x21   :  { %709 = vmatpush.bf16.msra.mxu3 %v1763_v7  ;;  %v1760_v20 = vld [vmem:[#allocation2 + $0xd8] sm:$0xff]  ;;  %v1759_v24 = vld [vmem:[#allocation2 + $0xd0] sm:$0xff]  ;;  %v1734_v25 = vld [vmem:[#allocation2 + $0x8] sm:$0xff] }
  0x22   :  { %671 = vmatpush.bf16.msra.mxu0 %v1738_v8  ;;  %v1742_v26 = vld [vmem:[#allocation2 + $0x48] sm:$0xff]  ;;  %v1733_v29 = vld [vmem:[#allocation2] sm:$0xff]  ;;  %v1772_v33 = vld [vmem:[#allocation2 + $0x138] sm:$0xff] }
  0x23   :  { %684 = vmatpush.bf16.msra.mxu1 %v1746_v9  ;;  %v1750_v27 = vld [vmem:[#allocation2 + $0x88] sm:$0xff]  ;;  %v1741_v30 = vld [vmem:[#allocation2 + $0x40] sm:$0xff]  ;;  %v1780_v34 = vld [vmem:[#allocation2 + $0x178] sm:$0xff] }
  0x24   :  { %697 = vmatpush.bf16.msra.mxu2 %v1754_v10  ;;  %v1758_v28 = vld [vmem:[#allocation2 + $0xc8] sm:$0xff]  ;;  %v1749_v31 = vld [vmem:[#allocation2 + $0x80] sm:$0xff]  ;;  %v1788_v35 = vld [vmem:[#allocation2 + $0x1b8] sm:$0xff] }
  0x25   :  { %710 = vmatpush.bf16.msra.mxu3 %v1762_v11  ;;  %v1757_v32 = vld [vmem:[#allocation2 + $0xc0] sm:$0xff]  ;;  %v1796_v36 = vld [vmem:[#allocation2 + $0x1f8] sm:$0xff]  ;;  %v1771_v37 = vld [vmem:[#allocation2 + $0x130] sm:$0xff] }
  0x26   :  { %672 = vmatpush.bf16.msra.mxu0 %v1737_v12  ;;  %v1779_v38 = vld [vmem:[#allocation2 + $0x170] sm:$0xff]  ;;  %v815_v47 = vld [vmem:[%s2256_s5] sm:$0x3]  ;;  %v1770_v50 = vld [vmem:[#allocation2 + $0x128] sm:$0xff] }
  0x27   :  { %685 = vmatpush.bf16.msra.mxu1 %v1745_v13  ;;  %v271_v39 = vld [vmem:[#allocation1 + $0x12] sm:$0xff]  ;;  %v269_v40 = vld [vmem:[#allocation1] sm:$0xff]  ;;  %v270_v42 = vld [vmem:[#allocation1 + $0x9] sm:$0xff] }
  0x28   :  { %698 = vmatpush.bf16.msra.mxu2 %v1753_v14  ;;  %v272_v41 = vld [vmem:[#allocation1 + $0x1b] sm:$0xff]  ;;  %v2097_v43 = vld [vmem:[#allocation1 + $0x24] sm:$0xff]  ;;  %v2099_v44 = vld [vmem:[#allocation1 + $0x2d] sm:$0xff] }
  0x29   :  { %711 = vmatpush.bf16.msra.mxu3 %v1761_v15  ;;  %v2101_v45 = vld [vmem:[#allocation1 + $0x36] sm:$0xff]  ;;  %v2103_v46 = vld [vmem:[#allocation1 + $0x3f] sm:$0xff]  ;;  %v1769_v54 = vld [vmem:[#allocation2 + $0x120] sm:$0xff] }
  0x2a   :  { %673 = vmatpush.bf16.msra.mxu0 %v1736_v17  ;;  %v1787_v48 = vld [vmem:[#allocation2 + $0x1b0] sm:$0xff]  ;;  %853 = vst [vmem:[#allocation1] ss:$9 sm:$0xff] %v815_v47  ;;  %v1778_v51 = vld [vmem:[#allocation2 + $0x168] sm:$0xff]  ;;  %v1777_v55 = vld [vmem:[#allocation2 + $0x160] sm:$0xff] }
  0x2b   :  { %686 = vmatpush.bf16.msra.mxu1 %v1744_v18  ;;  %v1795_v49 = vld [vmem:[#allocation2 + $0x1f0] sm:$0xff]  ;;  %v1786_v52 = vld [vmem:[#allocation2 + $0x1a8] sm:$0xff]  ;;  %v1785_v56 = vld [vmem:[#allocation2 + $0x1a0] sm:$0xff] }
  0x2c   :  { %699 = vmatpush.bf16.msra.mxu2 %v1752_v19  ;;  %v1794_v53 = vld [vmem:[#allocation2 + $0x1e8] sm:$0xff]  ;;  %v1793_v57 = vld [vmem:[#allocation2 + $0x1e0] sm:$0xff]  ;;  %v1768_v58 = vld [vmem:[#allocation2 + $0x118] sm:$0xff] }
  0x2d   :  { %712 = vmatpush.bf16.msra.mxu3 %v1760_v20  ;;  %v1776_v59 = vld [vmem:[#allocation2 + $0x158] sm:$0xff]  ;;  %v1767_v62 = vld [vmem:[#allocation2 + $0x110] sm:$0xff]  ;;  %v1766_v2 = vld [vmem:[#allocation2 + $0x108] sm:$0xff] }
  0x2e   :  { %674 = vmatpush.bf16.msra.mxu0 %v1735_v21  ;;  %v1784_v60 = vld [vmem:[#allocation2 + $0x198] sm:$0xff]  ;;  %v1775_v63 = vld [vmem:[#allocation2 + $0x150] sm:$0xff]  ;;  %v1774_v3 = vld [vmem:[#allocation2 + $0x148] sm:$0xff] }
  0x2f   :  { %687 = vmatpush.bf16.msra.mxu1 %v1743_v22  ;;  %v1792_v61 = vld [vmem:[#allocation2 + $0x1d8] sm:$0xff]  ;;  %v1783_v0 = vld [vmem:[#allocation2 + $0x190] sm:$0xff]  ;;  %v1782_v4 = vld [vmem:[#allocation2 + $0x188] sm:$0xff] }
  0x30   :  { %700 = vmatpush.bf16.msra.mxu2 %v1751_v23  ;;  %v1791_v1 = vld [vmem:[#allocation2 + $0x1d0] sm:$0xff]  ;;  %v1790_v5 = vld [vmem:[#allocation2 + $0x1c8] sm:$0xff]  ;;  %v1765_v6 = vld [vmem:[#allocation2 + $0x100] sm:$0xff] }
  0x31   :  { %713 = vmatpush.bf16.msra.mxu3 %v1759_v24  ;;  %v1773_v7 = vld [vmem:[#allocation2 + $0x140] sm:$0xff]  ;;  %v1812_v10 = vld [vmem:[%s2257_s6 + $0x78] sm:$0xff]  ;;  %v1811_v12 = vld [vmem:[%s2257_s6 + $0x70] sm:$0xff] }
  0x32   :  { %675 = vmatpush.bf16.msra.mxu0 %v1734_v25  ;;  %v1781_v8 = vld [vmem:[#allocation2 + $0x180] sm:$0xff]  ;;  %v1804_v11 = vld [vmem:[%s2257_s6 + $0x38] sm:$0xff]  ;;  %v1803_v13 = vld [vmem:[%s2257_s6 + $0x30] sm:$0xff] }
  0x33   :  { %688 = vmatpush.bf16.msra.mxu1 %v1742_v26  ;;  %v1789_v9 = vld [vmem:[#allocation2 + $0x1c0] sm:$0xff]  ;;  %v789_v14 = vld [vmem:[%s2254_s3 + $0x78] sm:$0xff]  ;;  %v788_v15 = vld [vmem:[%s2254_s3 + $0x70] sm:$0xff] }
  0x34   :  { %701 = vmatpush.bf16.msra.mxu2 %v1750_v27  ;;  %v1810_v16 = vld [vmem:[%s2257_s6 + $0x68] sm:$0xff]  ;;  %v786_v19 = vld [vmem:[%s2254_s3 + $0x60] sm:$0xff]  ;;  %v785_v22 = vld [vmem:[%s2254_s3 + $0x58] sm:$0xff] }
  0x35   :  { %714 = vmatpush.bf16.msra.mxu3 %v1758_v28  ;;  %v1802_v17 = vld [vmem:[%s2257_s6 + $0x28] sm:$0xff]  ;;  %v1809_v20 = vld [vmem:[%s2257_s6 + $0x60] sm:$0xff]  ;;  %v784_v23 = vld [vmem:[%s2254_s3 + $0x50] sm:$0xff] }
  0x36   :  { %676 = vmatpush.bf16.msra.mxu0 %v1733_v29  ;;  %v787_v18 = vld [vmem:[%s2254_s3 + $0x68] sm:$0xff]  ;;  %v1801_v21 = vld [vmem:[%s2257_s6 + $0x20] sm:$0xff]  ;;  %v1808_v24 = vld [vmem:[%s2257_s6 + $0x58] sm:$0xff] }
  0x37   :  { %689 = vmatpush.bf16.msra.mxu1 %v1741_v30  ;;  %v1800_v25 = vld [vmem:[%s2257_s6 + $0x18] sm:$0xff]  ;;  %v783_v26 = vld [vmem:[%s2254_s3 + $0x48] sm:$0xff]  ;;  %v782_v27 = vld [vmem:[%s2254_s3 + $0x40] sm:$0xff] }
  0x38   :  { %702 = vmatpush.bf16.msra.mxu2 %v1749_v31  ;;  %v1807_v28 = vld [vmem:[%s2257_s6 + $0x50] sm:$0xff]  ;;  %v781_v30 = vld [vmem:[%s2254_s3 + $0x38] sm:$0xff]  ;;  %v774_v47 = vld [vmem:[%s2254_s3] sm:$0xff] }
  0x39   :  { %715 = vmatpush.bf16.msra.mxu3 %v1757_v32  ;;  %677 = vmatmul.bf16.vlgmr.msra.gmra.mxu0 %v269_v40  ;;  %v1799_v29 = vld [vmem:[%s2257_s6 + $0x10] sm:$0xff]  ;;  %v1806_v32 = vld [vmem:[%s2257_s6 + $0x48] sm:$0xff]  ;;  %v777_v40 = vld [vmem:[%s2254_s3 + $0x18] sm:$0xff] }
  0x3a   :  { %721 = vmatpush.bf16.msrb.mxu0 %v1772_v33  ;;  %690 = vmatmul.bf16.vlgmr.msra.gmra.mxu1 %v270_v42  ;;  %v780_v31 = vld [vmem:[%s2254_s3 + $0x30] sm:$0xff]  ;;  %v1798_v33 = vld [vmem:[%s2257_s6 + $0x8] sm:$0xff] }
  0x3b   :  { %734 = vmatpush.bf16.msrb.mxu1 %v1780_v34  ;;  %703 = vmatmul.bf16.vlgmr.msra.gmra.mxu2 %v271_v39  ;;  %v1805_v34 = vld [vmem:[%s2257_s6 + $0x40] sm:$0xff]  ;;  %v776_v42 = vld [vmem:[%s2254_s3 + $0x10] sm:$0xff] }
  0x3c   :  { %747 = vmatpush.bf16.msrb.mxu2 %v1788_v35  ;;  %716 = vmatmul.bf16.vlgmr.msra.gmra.mxu3 %v272_v41  ;;  %v1797_v35 = vld [vmem:[%s2257_s6] sm:$0xff] }
  0x3d   :  { %760 = vmatpush.bf16.msrb.mxu3 %v1796_v36  ;;  %v855_v36 = vld [vmem:[#allocation1 + $0x9] sm:$0xff]  ;;  %v778_v39 = vld [vmem:[%s2254_s3 + $0x20] sm:$0xff] }
  0x3e   :  { %722 = vmatpush.bf16.msrb.mxu0 %v1771_v37  ;;  %v854_v37 = vld [vmem:[#allocation1] sm:$0xff] }
  0x3f   :  { %735 = vmatpush.bf16.msrb.mxu1 %v1779_v38  ;;  %v779_v38 = vld [vmem:[%s2254_s3 + $0x28] sm:$0xff]  ;;  %v1828_v41 = vld [vmem:[#allocation6 + $0x78] sm:$0xff] }
  0x40   :  { %748 = vmatpush.bf16.msrb.mxu2 %v1787_v48  ;;  %v994_v48 = vld [vmem:[#allocation4 + $0x68] sm:$0xff] }
  0x41   :  { %761 = vmatpush.bf16.msrb.mxu3 %v1795_v49  ;;  %v1820_v49 = vld [vmem:[#allocation6 + $0x38] sm:$0xff] }
  0x42   :  { %723 = vmatpush.bf16.msrb.mxu0 %v1770_v50  ;;  %v993_v50 = vld [vmem:[#allocation4 + $0x60] sm:$0xff] }
  0x43   :  { %736 = vmatpush.bf16.msrb.mxu1 %v1778_v51  ;;  %v1826_v51 = vld [vmem:[#allocation6 + $0x68] sm:$0xff] }
  0x44   :  { %749 = vmatpush.bf16.msrb.mxu2 %v1786_v52  ;;  %v992_v52 = vld [vmem:[#allocation4 + $0x58] sm:$0xff] }
  0x45   :  { %762 = vmatpush.bf16.msrb.mxu3 %v1794_v53  ;;  %v1819_v53 = vld [vmem:[#allocation6 + $0x30] sm:$0xff] }
  0x46   :  { %724 = vmatpush.bf16.msrb.mxu0 %v1769_v54  ;;  %v991_v54 = vld [vmem:[#allocation4 + $0x50] sm:$0xff] }
  0x47   :  { %737 = vmatpush.bf16.msrb.mxu1 %v1777_v55  ;;  %v1825_v55 = vld [vmem:[#allocation6 + $0x60] sm:$0xff] }
  0x48   :  { %750 = vmatpush.bf16.msrb.mxu2 %v1785_v56  ;;  %v990_v56 = vld [vmem:[#allocation4 + $0x48] sm:$0xff] }
  0x49   :  { %763 = vmatpush.bf16.msrb.mxu3 %v1793_v57  ;;  %v1818_v57 = vld [vmem:[#allocation6 + $0x28] sm:$0xff] }
  0x4a   :  { %725 = vmatpush.bf16.msrb.mxu0 %v1768_v58  ;;  %v1824_v58 = vld [vmem:[#allocation6 + $0x58] sm:$0xff] }
  0x4b   :  { %738 = vmatpush.bf16.msrb.mxu1 %v1776_v59  ;;  %v989_v59 = vld [vmem:[#allocation4 + $0x40] sm:$0xff] }
  0x4c   :  { %751 = vmatpush.bf16.msrb.mxu2 %v1784_v60  ;;  %v1817_v60 = vld [vmem:[#allocation6 + $0x20] sm:$0xff] }
  0x4d   :  { %764 = vmatpush.bf16.msrb.mxu3 %v1792_v61  ;;  %v988_v61 = vld [vmem:[#allocation4 + $0x38] sm:$0xff] }
  0x4e   :  { %726 = vmatpush.bf16.msrb.mxu0 %v1767_v62 }
  0x4f   :  { %739 = vmatpush.bf16.msrb.mxu1 %v1775_v63  ;;  %v987_v63 = vld [vmem:[#allocation4 + $0x30] sm:$0xff] }
  0x50   :  { %752 = vmatpush.bf16.msrb.mxu2 %v1783_v0  ;;  %v1823_v0 = vld [vmem:[#allocation6 + $0x50] sm:$0xff] }
  0x51   :  { %765 = vmatpush.bf16.msrb.mxu3 %v1791_v1 }
  0x52   :  { %727 = vmatpush.bf16.msrb.mxu0 %v1766_v2  ;;  %v1816_v2 = vld [vmem:[#allocation6 + $0x18] sm:$0xff] }
  0x53   :  { %740 = vmatpush.bf16.msrb.mxu1 %v1774_v3  ;;  %v986_v3 = vld [vmem:[#allocation4 + $0x28] sm:$0xff] }
  0x54   :  { %753 = vmatpush.bf16.msrb.mxu2 %v1782_v4  ;;  %v1822_v4 = vld [vmem:[#allocation6 + $0x48] sm:$0xff] }
  0x55   :  { %766 = vmatpush.bf16.msrb.mxu3 %v1790_v5  ;;  %v1022_v5 = vld [vmem:[%s2261_s10] sm:$0x3] }
  0x56   :  { %728 = vmatpush.bf16.msrb.mxu0 %v1765_v6  ;;  %v985_v6 = vld [vmem:[#allocation4 + $0x20] sm:$0xff]  ;;  %1060 = vst [vmem:[#allocation1] ss:$9 sm:$0xff] %v1022_v5 }
  0x57   :  { %741 = vmatpush.bf16.msrb.mxu1 %v1773_v7  ;;  %v1200_v5 = vld [vmem:[#allocation7 + $0x60] sm:$0xff] }
  0x58   :  { %754 = vmatpush.bf16.msrb.mxu2 %v1781_v8  ;;  %v1815_v8 = vld [vmem:[#allocation6 + $0x10] sm:$0xff] }
  0x59   :  { %767 = vmatpush.bf16.msrb.mxu3 %v1789_v9  ;;  %729 = vmatmul.bf16.vlgmr.msrb.gmra.mxu0 %v2097_v43  ;;  %v996_v43 = vld [vmem:[#allocation4 + $0x78] sm:$0xff] }
  0x5a   :  { %742 = vmatmul.bf16.vlgmr.msrb.gmra.mxu1 %v2099_v44  ;;  %794 = vmatpush.msra.mxu0 %v789_v14  ;;  %v775_v44 = vld [vmem:[%s2254_s3 + $0x8] sm:$0xff]  ;;  %v983_v14 = vld [vmem:[#allocation4 + $0x10] sm:$0xff] }
  0x5b   :  { %954 = vmatpush.bf16.msra.mxu1 %v1804_v11  ;;  %755 = vmatmul.bf16.vlgmr.msrb.gmra.mxu2 %v2101_v45  ;;  %v995_v45 = vld [vmem:[#allocation4 + $0x70] sm:$0xff] }
  0x5c   :  { %967 = vmatpush.bf16.msra.mxu2 %v1812_v10  ;;  %768 = vmatmul.bf16.vlgmr.msrb.gmra.mxu3 %v2103_v46  ;;  %v1827_v46 = vld [vmem:[#allocation6 + $0x70] sm:$0xff]  ;;  %v984_v10 = vld [vmem:[#allocation4 + $0x18] sm:$0xff] }
  0x5d   :  { %795 = vmatpush.msra.mxu0 %v788_v15  ;;  %1001 = vmatpush.msra.mxu3 %v996_v43  ;;  %v1814_v15 = vld [vmem:[#allocation6 + $0x8] sm:$0xff] }
  0x5f   :  { %955 = vmatpush.bf16.msra.mxu1 %v1803_v13  ;;  %796 = vmatpush.msra.mxu0 %v787_v18  ;;  %v981_v18 = vld [vmem:[#allocation4] sm:$0xff] }
  0x60   :  { %968 = vmatpush.bf16.msra.mxu2 %v1811_v12  ;;  %1002 = vmatpush.msra.mxu3 %v995_v45  ;;  %v1821_v12 = vld [vmem:[#allocation6 + $0x40] sm:$0xff] }
  0x61   :  { %797 = vmatpush.msra.mxu0 %v786_v19  ;;  %v1244_v19 = vld [vmem:[#allocation9 + $0x78] sm:$0xff] }
  0x62   :  { %1003 = vmatpush.msra.mxu3 %v994_v48  ;;  %v1232_v48 = vld [vmem:[#allocation9 + $0x18] sm:$0xff] }
  0x63   :  { %956 = vmatpush.bf16.msra.mxu1 %v1802_v17  ;;  %798 = vmatpush.msra.mxu0 %v785_v22  ;;  %v1062_v17 = vld [vmem:[#allocation1 + $0x9] sm:$0xff] }
  0x64   :  { %969 = vmatpush.bf16.msra.mxu2 %v1810_v16  ;;  %1004 = vmatpush.msra.mxu3 %v993_v50  ;;  %v982_v16 = vld [vmem:[#allocation4 + $0x8] sm:$0xff] }
  0x65   :  { %799 = vmatpush.msra.mxu0 %v784_v23  ;;  %v1243_v23 = vld [vmem:[#allocation9 + $0x70] sm:$0xff] }
  0x66   :  { %1005 = vmatpush.msra.mxu3 %v992_v52 }
  0x67   :  { %957 = vmatpush.bf16.msra.mxu1 %v1801_v21  ;;  %800 = vmatpush.msra.mxu0 %v783_v26  ;;  %v1813_v21 = vld [vmem:[#allocation6] sm:$0xff]  ;;  %v1242_v26 = vld [vmem:[#allocation9 + $0x68] sm:$0xff] }
  0x68   :  { %970 = vmatpush.bf16.msra.mxu2 %v1809_v20  ;;  %1006 = vmatpush.msra.mxu3 %v991_v54  ;;  %v1838_v20 = vld [vmem:[%s2253_s2] ss:$0 sm:$0xff]  ;;  %v1229_v54 = vld [vmem:[#allocation9] sm:$0xff] }
  0x69   :  { %801 = vmatpush.msra.mxu0 %v782_v27  ;;  %v1241_v27 = vld [vmem:[#allocation9 + $0x60] sm:$0xff] }
  0x6a   :  { %1007 = vmatpush.msra.mxu3 %v990_v56 }
  0x6b   :  { %958 = vmatpush.bf16.msra.mxu1 %v1800_v25  ;;  %802 = vmatpush.msra.mxu0 %v781_v30  ;;  %v1239_v30 = vld [vmem:[#allocation9 + $0x50] sm:$0xff] }
  0x6c   :  { %971 = vmatpush.bf16.msra.mxu2 %v1808_v24  ;;  %1008 = vmatpush.msra.mxu3 %v989_v59  ;;  %v1257_v59 = vld [vmem:[#allocation9 + $0xe0] sm:$0xff] }
  0x6d   :  { %803 = vmatpush.msra.mxu0 %v780_v31  ;;  %v1238_v31 = vld [vmem:[#allocation9 + $0x48] sm:$0xff] }
  0x6e   :  { %1009 = vmatpush.msra.mxu3 %v988_v61  ;;  %v1276_v61 = vld [vmem:[#allocation9 + $0x178] sm:$0xff] }
  0x6f   :  { %959 = vmatpush.bf16.msra.mxu1 %v1799_v29  ;;  %804 = vmatpush.msra.mxu0 %v779_v38 }
  0x70   :  { %972 = vmatpush.bf16.msra.mxu2 %v1807_v28  ;;  %1010 = vmatpush.msra.mxu3 %v987_v63  ;;  %v1240_v28 = vld [vmem:[#allocation9 + $0x58] sm:$0xff]  ;;  %v1202_v63 = vld [vmem:[#allocation7 + $0x70] sm:$0xff] }
  0x71   :  { %805 = vmatpush.msra.mxu0 %v778_v39  ;;  %v1235_v39 = vld [vmem:[#allocation9 + $0x30] sm:$0xff] }
  0x72   :  { %1011 = vmatpush.msra.mxu3 %v986_v3  ;;  %v1274_v3 = vld [vmem:[#allocation9 + $0x168] sm:$0xff] }
  0x73   :  { %960 = vmatpush.bf16.msra.mxu1 %v1798_v33  ;;  %806 = vmatpush.msra.mxu0 %v777_v40  ;;  %v1237_v33 = vld [vmem:[#allocation9 + $0x40] sm:$0xff]  ;;  %v1234_v40 = vld [vmem:[#allocation9 + $0x28] sm:$0xff] }
  0x74   :  { %973 = vmatpush.bf16.msra.mxu2 %v1806_v32  ;;  %1012 = vmatpush.msra.mxu3 %v985_v6  ;;  %v1273_v6 = vld [vmem:[#allocation9 + $0x160] sm:$0xff] }
  0x75   :  { %807 = vmatpush.msra.mxu0 %v776_v42 }
  0x76   :  { %1013 = vmatpush.msra.mxu3 %v984_v10  ;;  %v1253_v10 = vld [vmem:[#allocation9 + $0xc0] sm:$0xff] }
  0x77   :  { %961 = vmatpush.bf16.msra.mxu1 %v1797_v35  ;;  %808 = vmatpush.msra.mxu0 %v775_v44  ;;  %v1233_v44 = vld [vmem:[#allocation9 + $0x20] sm:$0xff] }
  0x78   :  { %974 = vmatpush.bf16.msra.mxu2 %v1805_v34  ;;  %1014 = vmatpush.msra.mxu3 %v983_v14  ;;  %v1236_v34 = vld [vmem:[#allocation9 + $0x38] sm:$0xff]  ;;  %v1197_v14 = vld [vmem:[#allocation7 + $0x48] sm:$0xff] }
  0x79   :  { %809 = vmatpush.msra.mxu0 %v774_v47 }
  0x7a   :  { %962 = vmatmul.bf16.vlgmr.msra.gmra.mxu1 %v854_v37  ;;  %1015 = vmatpush.msra.mxu3 %v982_v16  ;;  %v1270_v16 = vld [vmem:[#allocation9 + $0x148] sm:$0xff] }
  0x7b   :  { %975 = vmatmul.bf16.vlgmr.msra.gmra.mxu2 %v855_v36  ;;  %1174 = vmatpush.bf16.msrb.mxu1 %v1828_v41 }
  0x7c   :  { %1161 = vmatpush.bf16.msrb.mxu0 %v1820_v49  ;;  %1016 = vmatpush.msra.mxu3 %v981_v18  ;;  %v1231_v49 = vld [vmem:[#allocation9 + $0x10] sm:$0xff] }
  0x7d   :  { %v1251_v18 = vld [vmem:[#allocation9 + $0xb0] sm:$0xff] }
  0x7e   :  { %1281 = vmatpush.msrb.mxu3 %v1244_v19  ;;  %v1196_v19 = vld [vmem:[#allocation7 + $0x40] sm:$0xff] }
  0x7f   :  { %1175 = vmatpush.bf16.msrb.mxu1 %v1827_v46 }
  0x80   :  { %1162 = vmatpush.bf16.msrb.mxu0 %v1819_v53  ;;  %1282 = vmatpush.msrb.mxu3 %v1243_v23  ;;  %v1260_v53 = vld [vmem:[#allocation9 + $0xf8] sm:$0xff]  ;;  %v1249_v23 = vld [vmem:[#allocation9 + $0xa0] sm:$0xff] }
  0x82   :  { %1283 = vmatpush.msrb.mxu3 %v1242_v26 }
  0x83   :  { %1176 = vmatpush.bf16.msrb.mxu1 %v1826_v51  ;;  %v1230_v51 = vld [vmem:[#allocation9 + $0x8] sm:$0xff] }
  0x84   :  { %1163 = vmatpush.bf16.msrb.mxu0 %v1818_v57  ;;  %1284 = vmatpush.msrb.mxu3 %v1241_v27  ;;  %v1247_v27 = vld [vmem:[#allocation9 + $0x90] sm:$0xff] }
  0x86   :  { %1285 = vmatpush.msrb.mxu3 %v1240_v28 }
  0x87   :  { %1177 = vmatpush.bf16.msrb.mxu1 %v1825_v55  ;;  %v1259_v55 = vld [vmem:[#allocation9 + $0xf0] sm:$0xff] }
  0x88   :  { %1164 = vmatpush.bf16.msrb.mxu0 %v1817_v60  ;;  %1286 = vmatpush.msrb.mxu3 %v1239_v30  ;;  %v1203_v60 = vld [vmem:[#allocation7 + $0x78] sm:$0xff]  ;;  %v1246_v30 = vld [vmem:[#allocation9 + $0x88] sm:$0xff] }
  0x89   :  { %1208 = vmatpush.msrb.mxu2 %v1203_v60  ;;  %v1842_v60 = vld [vmem:[%s2260_s9] ss:$0 sm:$0xff] }
  0x8a   :  { %1287 = vmatpush.msrb.mxu3 %v1238_v31  ;;  %v1245_v31 = vld [vmem:[#allocation9 + $0x80] sm:$0xff] }
  0x8b   :  { %1178 = vmatpush.bf16.msrb.mxu1 %v1824_v58  ;;  %v1258_v58 = vld [vmem:[#allocation9 + $0xe8] sm:$0xff]  ;;  %1209 = vmatpush.msrb.mxu2 %v1202_v63  ;;  %v1843_v63 = vld [vmem:[%s2267_s16] ss:$0 sm:$0xff] }
  0x8c   :  { %1165 = vmatpush.bf16.msrb.mxu0 %v1816_v2  ;;  %1288 = vmatpush.msrb.mxu3 %v1237_v33  ;;  %v1201_v2 = vld [vmem:[#allocation7 + $0x68] sm:$0xff]  ;;  %v1195_v33 = vld [vmem:[#allocation7 + $0x38] sm:$0xff] }
  0x8d   :  { %1210 = vmatpush.msrb.mxu2 %v1201_v2 }
  0x8e   :  { %1289 = vmatpush.msrb.mxu3 %v1236_v34  ;;  %v1268_v34 = vld [vmem:[#allocation9 + $0x138] sm:$0xff] }
  0x8f   :  { %1179 = vmatpush.bf16.msrb.mxu1 %v1823_v0  ;;  %v1275_v0 = vld [vmem:[#allocation9 + $0x170] sm:$0xff]  ;;  %1211 = vmatpush.msrb.mxu2 %v1200_v5 }
  0x90   :  { %1166 = vmatpush.bf16.msrb.mxu0 %v1815_v8  ;;  %1290 = vmatpush.msrb.mxu3 %v1235_v39  ;;  %v1199_v8 = vld [vmem:[#allocation7 + $0x58] sm:$0xff]  ;;  %v1266_v39 = vld [vmem:[#allocation9 + $0x128] sm:$0xff] }
  0x91   :  { %1212 = vmatpush.msrb.mxu2 %v1199_v8 }
  0x92   :  { %1291 = vmatpush.msrb.mxu3 %v1234_v40  ;;  %v1192_v40 = vld [vmem:[#allocation7 + $0x20] sm:$0xff] }
  0x93   :  { %1180 = vmatpush.bf16.msrb.mxu1 %v1822_v4  ;;  %v1255_v4 = vld [vmem:[#allocation9 + $0xd0] sm:$0xff] }
  0x94   :  { %1167 = vmatpush.bf16.msrb.mxu0 %v1814_v15  ;;  %1292 = vmatpush.msrb.mxu3 %v1233_v44  ;;  %v1839_v15 = vld [vmem:[%s2258_s7] ss:$0 sm:$0xff]  ;;  %v1190_v44 = vld [vmem:[#allocation7 + $0x10] sm:$0xff] }
  0x96   :  { %1293 = vmatpush.msrb.mxu3 %v1232_v48  ;;  %v1262_v48 = vld [vmem:[#allocation9 + $0x108] sm:$0xff] }
  0x97   :  { %1181 = vmatpush.bf16.msrb.mxu1 %v1821_v12  ;;  %v1271_v12 = vld [vmem:[#allocation9 + $0x150] sm:$0xff] }
  0x98   :  { %1168 = vmatpush.bf16.msrb.mxu0 %v1813_v21  ;;  %1294 = vmatpush.msrb.mxu3 %v1231_v49  ;;  %v1250_v21 = vld [vmem:[#allocation9 + $0xa8] sm:$0xff]  ;;  %v1188_v49 = vld [vmem:[#allocation7] sm:$0xff] }
  0x9a   :  { %1182 = vmatmul.bf16.vlgmr.msrb.gmra.mxu1 %v1062_v17  ;;  %1295 = vmatpush.msrb.mxu3 %v1230_v51  ;;  %v1840_v51 = vld [vmem:[%s2255_s4] ss:$0 sm:$0xff] }
  0x9b   :  { %1321 = vmatpush.msra.mxu1 %v1276_v61 }
  0x9c   :  { %1296 = vmatpush.msrb.mxu3 %v1229_v54  ;;  %v1841_v54 = vld [vmem:[%s2263_s12] ss:$0 sm:$0xff] }
  0x9d   :  { %1322 = vmatpush.msra.mxu1 %v1275_v0 }
  0x9f   :  { %1323 = vmatpush.msra.mxu1 %v1274_v3 }
  0xa1   :  { %1324 = vmatpush.msra.mxu1 %v1273_v6  ;;  %v1844_v6 = vld [vmem:[%s2265_s14] ss:$0 sm:$0xff] }
  0xb6   :  { %v678_v62 = vpop.f32.mrf.mxu0 }
  0xb7   :  { %v691_v1 = vpop.f32.mrf.mxu1  ;;  %v679_v25 = vadd.f32 %v1838_v20, %v678_v62  ;;  %v1061_v62 = vld [vmem:[#allocation1] sm:$0xff]  ;;  %v1269_v20 = vld [vmem:[#allocation9 + $0x140] sm:$0xff] }
  0xb9   :  { %v692_v29 = vadd.f32 %v691_v1, %v679_v25  ;;  %v1256_v1 = vld [vmem:[#allocation9 + $0xd8] sm:$0xff] }
  0xba   :  { %v1248_v25 = vld [vmem:[#allocation9 + $0x98] sm:$0xff] }
  0xbe   :  { %v704_v7 = vpop.f32.mrf.mxu2  ;;  %v680_v11 = vpop.f32.mrf.mxu0 }
  0xbf   :  { %v717_v9 = vpop.f32.mrf.mxu3  ;;  %v693_v13 = vpop.f32.mrf.mxu1  ;;  %v705_v32 = vadd.f32 %v704_v7, %v692_v29  ;;  %v1254_v7 = vld [vmem:[#allocation9 + $0xc8] sm:$0xff]  ;;  %v1198_v11 = vld [vmem:[#allocation7 + $0x50] sm:$0xff] }
  0xc0   :  { %v1252_v13 = vld [vmem:[#allocation9 + $0xb8] sm:$0xff]  ;;  %1213 = vmatpush.msrb.mxu2 %v1198_v11 }
  0xc1   :  { %v718_v35 = vadd.f32 %v717_v9, %v705_v32  ;;  %v1272_v9 = vld [vmem:[#allocation9 + $0x158] sm:$0xff] }
  0xc2   :  { %1325 = vmatpush.msra.mxu1 %v1272_v9  ;;  %1214 = vmatpush.msrb.mxu2 %v1197_v14 }
  0xc4   :  { %1326 = vmatpush.msra.mxu1 %v1271_v12  ;;  %1215 = vmatpush.msrb.mxu2 %v1196_v19 }
  0xc6   :  { %v706_v22 = vpop.f32.mrf.mxu2  ;;  %1327 = vmatpush.msra.mxu1 %v1270_v16  ;;  %1216 = vmatpush.msrb.mxu2 %v1195_v33 }
  0xc7   :  { %v719_v24 = vpop.f32.mrf.mxu3 }
  0xc8   :  { %1328 = vmatpush.msra.mxu1 %v1269_v20 }
  0xca   :  { %1329 = vmatpush.msra.mxu1 %v1268_v34 }
  0xd6   :  { %v730_v36 = vpop.f32.mrf.mxu0 }
  0xd7   :  { %v743_v37 = vpop.f32.mrf.mxu1  ;;  %v731_v38 = vadd.f32 %v730_v36, %v718_v35  ;;  %v1194_v35 = vld [vmem:[#allocation7 + $0x30] sm:$0xff] }
  0xd8   :  { %v1267_v36 = vld [vmem:[#allocation9 + $0x130] sm:$0xff]  ;;  %1217 = vmatpush.msrb.mxu2 %v1194_v35 }
  0xd9   :  { %v744_v41 = vadd.f32 %v743_v37, %v731_v38  ;;  %1330 = vmatpush.msra.mxu1 %v1267_v36  ;;  %v1193_v38 = vld [vmem:[#allocation7 + $0x28] sm:$0xff] }
  0xda   :  { %1218 = vmatpush.msrb.mxu2 %v1193_v38 }
  0xdb   :  { %1331 = vmatpush.msra.mxu1 %v1266_v39 }
  0xdc   :  { %1219 = vmatpush.msrb.mxu2 %v1192_v40 }
  0xde   :  { %v756_v42 = vpop.f32.mrf.mxu2  ;;  %v732_v46 = vpop.f32.mrf.mxu0 }
  0xdf   :  { %v769_v43 = vpop.f32.mrf.mxu3  ;;  %v757_v45 = vadd.f32 %v756_v42, %v744_v41  ;;  %v745_v47 = vpop.f32.mrf.mxu1  ;;  %v1265_v41 = vld [vmem:[#allocation9 + $0x120] sm:$0xff]  ;;  %v1191_v42 = vld [vmem:[#allocation7 + $0x18] sm:$0xff] }
  0xe0   :  { %1332 = vmatpush.msra.mxu1 %v1265_v41  ;;  %1220 = vmatpush.msrb.mxu2 %v1191_v42  ;;  %v1189_v47 = vld [vmem:[#allocation7 + $0x8] sm:$0xff] }
  0xe1   :  { %v2214_v50 = vadd.f32 %v769_v43, %v757_v45  ;;  %v1264_v43 = vld [vmem:[#allocation9 + $0x118] sm:$0xff]  ;;  %v1263_v45 = vld [vmem:[#allocation9 + $0x110] sm:$0xff] }
  0xe2   :  { %1333 = vmatpush.msra.mxu1 %v1264_v43  ;;  %1221 = vmatpush.msrb.mxu2 %v1190_v44 }
  0xe3   :  { %v773_v52 = vmax.f32 %v2214_v50, 0.0  ;;  %v1261_v50 = vld [vmem:[#allocation9 + $0x100] sm:$0xff] }
  0xe4   :  { %1334 = vmatpush.msra.mxu1 %v1263_v45  ;;  %1222 = vmatpush.msrb.mxu2 %v1189_v47 }
  0xe5   :  { %810 = vmatmul.f32.vlgmr.msra.gmra.mxu0 %v773_v52 }
  0xe6   :  { %v758_v56 = vpop.f32.mrf.mxu2  ;;  %1301 = vmatpush.msra.mxu0 %v1260_v53  ;;  %1335 = vmatpush.msra.mxu1 %v1262_v48 }
  0xe7   :  { %v771_v57 = vpop.f32.mrf.mxu3  ;;  %1223 = vmatpush.msrb.mxu2 %v1188_v49 }
  0xe8   :  { %1302 = vmatpush.msra.mxu0 %v1259_v55  ;;  %1336 = vmatpush.msra.mxu1 %v1261_v50 }
  0xea   :  { %1303 = vmatpush.msra.mxu0 %v1258_v58 }
  0xec   :  { %1304 = vmatpush.msra.mxu0 %v1257_v59 }
  0xed   :  { %1169 = vmatmul.bf16.vlgmr.msrb.gmra.mxu0 %v1061_v62 }
  0xee   :  { %1305 = vmatpush.msra.mxu0 %v1256_v1 }
  0xf0   :  { %1306 = vmatpush.msra.mxu0 %v1255_v4 }
  0xf2   :  { %1307 = vmatpush.msra.mxu0 %v1254_v7 }
  0xf4   :  { %1308 = vmatpush.msra.mxu0 %v1253_v10 }
  0xf6   :  { %1309 = vmatpush.msra.mxu0 %v1252_v13 }
  0xf7   :  { %v963_v17 = vpop.f32.mrf.mxu1 }
  0xf8   :  { %v964_v22 = vadd.f32 %v1839_v15, %v963_v17  ;;  %1310 = vmatpush.msra.mxu0 %v1251_v18 }
  0xfa   :  { %1311 = vmatpush.msra.mxu0 %v1250_v21 }
  0xfc   :  { %1312 = vmatpush.msra.mxu0 %v1249_v23 }
  0xfe   :  { %v976_v24 = vpop.f32.mrf.mxu2  ;;  %1313 = vmatpush.msra.mxu0 %v1248_v25 }
  0xff   :  { %v977_v26 = vadd.f32 %v976_v24, %v964_v22  ;;  %v965_v28 = vpop.f32.mrf.mxu1 }
 0x100   :  { %1314 = vmatpush.msra.mxu0 %v1247_v27 }
 0x101   :  { %v980_v29 = vmax.f32 %v977_v26, 0.0 }
 0x102   :  { %1315 = vmatpush.msra.mxu0 %v1246_v30 }
 0x103   :  { %1017 = vmatmul.f32.vlgmr.msra.gmra.mxu3 %v980_v29 }
 0x104   :  { %1316 = vmatpush.msra.mxu0 %v1245_v31 }
 0x105   :  { %1317 = vmatmul.f32.vlgmr.msra.gmra.mxu0 %v980_v29 }
 0x106   :  { %v978_v32 = vpop.f32.mrf.mxu2 }
 0x10b   :  { %1297 = vmatmul.f32.vlgmr.msrb.gmra.mxu3 %v773_v52 }
 0x117   :  { %v1183_v37 = vpop.f32.mrf.mxu1 }
 0x11f   :  { %v1185_v46 = vpop.f32.mrf.mxu1 }
 0x162   :  { %v811_v52 = vpop.f32.mrf.mxu0 }
 0x163   :  { %v812_v53 = vadd.f32 %v1840_v51, %v811_v52 }
 0x165   :  { %814 = vst [vmem:[%s2268_s17] sm:$0x3] %v812_v53 }
 0x16a   :  { %v1170_v55 = vpop.f32.mrf.mxu0 }
 0x16b   :  { %v1171_v56 = vadd.f32 %v1841_v54, %v1170_v55 }
 0x16d   :  { %v1184_v57 = vadd.f32 %v1183_v37, %v1171_v56 }
 0x16f   :  { %v1187_v58 = vmax.f32 %v1184_v57, 0.0 }
 0x171   :  { %1224 = vmatmul.f32.vlgmr.msrb.gmra.mxu2 %v1187_v58  ;;  %1337 = vmatmul.f32.vlgmr.msra.gmra.mxu1 %v1187_v58 }
 0x172   :  { %v1172_v59 = vpop.f32.mrf.mxu0 }
 0x182   :  { %v1318_v2 = vpop.f32.mrf.mxu0 }
 0x186   :  { %v1018_v61 = vpop.f32.mrf.mxu3 }
 0x187   :  { %v1019_v62 = vadd.f32 %v1842_v60, %v1018_v61 }
 0x189   :  { %1021 = vst [vmem:[%s2268_s17 + $0x2] sm:$0x3] %v1019_v62 }
 0x18e   :  { %v1298_v0 = vpop.f32.mrf.mxu3 }
 0x18f   :  { %v1299_v1 = vadd.f32 %v1843_v63, %v1298_v0 }
 0x191   :  { %v1319_v3 = vadd.f32 %v1318_v2, %v1299_v1 }
 0x1ee   :  { %v1338_v4 = vpop.f32.mrf.mxu1 }
 0x1ef   :  { %v1339_v5 = vadd.f32 %v1338_v4, %v1319_v3 }
 0x1f1   :  { %1341 = vst [vmem:[%s2268_s17 + $0x6] sm:$0x3] %v1339_v5 }
 0x1f4   :  { %v1225_v7 = vpop.f32.mrf.mxu2 }
 0x1f5   :  { %v1226_v8 = vadd.f32 %v1844_v6, %v1225_v7 }
 0x1f7   :  { %1228 = vst [vmem:[%s2268_s17 + $0x4] sm:$0x3] %v1226_v8 }
 0x1f8   :  { %1346 = vsyncpa [#allocation3], 1 }
 0x1f9   :  { %1347 = vsyncpa [#allocation5], 1 }
 0x1fa   :  { %1348 = vsyncpa [#allocation8], 1 }

</bundles_post_ra>
